<compile_context>
chip_gen: v5e
topology: v5e:2x2
jax: 0.10.0
libtpu: 0.0.40
codegen_flags: <defaults>
</compile_context>

<pallas_src>
import functools

import jax
import jax.numpy as jnp
from jax import lax
from jax.experimental import pallas as pl
from jax.experimental.pallas import tpu as pltpu

H_A = 200            # actor trunk width
H_C = 100            # critic trunk width
H_T = H_A + H_C      # fused trunk width (logical)
H_T_PAD = 384        # fused trunk width padded to 3*128 for clean MXU/VPU tiles


def _round_up(x, m):
    return (x + m - 1) // m * m


def actor_critic_kernel(x_ref, wt_ref, bt_ref, wh_ref, bh_ref, out_ref, *, a_dim):
    # Trunk (feature-major): h = relu6(W_trunk^T @ x^T + b_trunk) -> [384, tb].
    # Contract the s_dim axis of both operands (standard "a @ b.T" pattern);
    # x may arrive as f32 or bf16 -- cast to the weight dtype in-kernel.
    x = x_ref[...].astype(wt_ref.dtype)
    h = lax.dot_general(
        wt_ref[...], x,
        dimension_numbers=(((1,), (1,)), ((), ())),
        preferred_element_type=jnp.float32,
    ) + bt_ref[...]
    h = jnp.clip(h, 0.0, 6.0)          # relu6; zero-padded trunk rows stay exactly 0

    # Fused heads: pre = W_head^T @ h + b_head -> [OUT_ROWS, tb].
    pre = (
        jnp.dot(wh_ref[...], h.astype(wh_ref.dtype),
                preferred_element_type=jnp.float32)
        + bh_ref[...]
    )

    # Per-row activation: rows [0, a) -> 180*tanh, [a, 2a) -> softplus + 1e-3,
    # row 2a -> identity (values).  Batch sits on lanes, so the transcendentals
    # only touch OUT_ROWS sublanes worth of vregs (8-14x less EUP work than the
    # old [tb, 128] slab).
    row = lax.broadcasted_iota(jnp.int32, pre.shape, 0)
    mu = 180.0 * jnp.tanh(pre)
    sigma = jnp.logaddexp(0.0, pre) + 0.001
    out_ref[...] = jnp.where(row < a_dim, mu,
                             jnp.where(row < 2 * a_dim, sigma, pre))


def fuse_params(params, a_dim, *, weight_dtype=jnp.float32):
    """Build fused, feature-major weights for the kernel.

    NOTE: all zero padding (trunk rows 300..383 and their bias entries, plus
    the zero blocks of the head weight) must stay exactly zero -- the kernel
    relies on it so padded rows contribute nothing to any real output.
    """
    s_dim = params["a1_w"].shape[0]
    out_rows = 2 * a_dim + 1

    # Trunk W^T [H_T_PAD, s_dim]: rows 0..199 actor, 200..299 critic, rest zero.
    wt = jnp.zeros((H_T_PAD, s_dim), jnp.float32)
    wt = wt.at[:H_A, :].set(params["a1_w"].T)
    wt = wt.at[H_A:H_A + H_C, :].set(params["c1_w"].T)
    bt = jnp.zeros((H_T_PAD, 1), jnp.float32)
    bt = bt.at[:H_A, 0].set(params["a1_b"][0])
    bt = bt.at[H_A:H_A + H_C, 0].set(params["c1_b"][0])

    # Head W^T [OUT_ROWS, H_T_PAD]: rows [0,a) mu, [a,2a) sigma, row 2a value.
    wh = jnp.zeros((out_rows, H_T_PAD), jnp.float32)
    wh = wh.at[:a_dim, :H_A].set(params["mu_w"].T)
    wh = wh.at[a_dim:2 * a_dim, :H_A].set(params["sg_w"].T)
    wh = wh.at[2 * a_dim, H_A:H_A + H_C].set(params["v_w"][:, 0])
    bh = jnp.zeros((out_rows, 1), jnp.float32)
    bh = bh.at[:a_dim, 0].set(params["mu_b"][0])
    bh = bh.at[a_dim:2 * a_dim, 0].set(params["sg_b"][0])
    bh = bh.at[2 * a_dim, 0].set(params["v_b"][0, 0])

    return {
        "trunk_w": wt.astype(weight_dtype),
        "trunk_b": bt,                       # f32, added after f32 accumulation
        "head_w": wh.astype(weight_dtype),
        "head_b": bh,
    }


def _choose_batch_tile(B, batch_tile):
    # The batch is the lane axis of the [OUT_ROWS, B] output, so any tile
    # smaller than the full batch must be a multiple of 128.  For B > 128 we
    # force >= 2 grid steps (>= 4 once B >= 512) so the "parallel" batch axis
    # shards across both TensorCores on v7x and x/out DMA overlaps compute.
    if B <= 128:
        return B
    tb = min(batch_tile, B)
    tb = min(tb, max(128, _round_up(pl.cdiv(B, 4), 128)))
    return _round_up(tb, 128)


def _vmem_bytes_estimate(tb, s_dim, out_rows):
    """Rough per-step VMEM working set (lane-padded, double-buffered blocks)."""
    lane, f32 = 128, 4
    x_blk = tb * max(_round_up(s_dim, lane), lane) * f32
    out_blk = _round_up(out_rows, 8) * _round_up(tb, lane) * f32
    h_tmp = H_T_PAD * tb * f32 * 2            # h slab + slack for pre/activations
    w_res = (H_T_PAD * lane                   # trunk W (lane-padded)
             + H_T_PAD * lane                 # trunk b (lane-padded)
             + _round_up(out_rows, 8) * H_T_PAD
             + _round_up(out_rows, 8) * lane) * f32 * 2
    return 2 * x_blk + 2 * out_blk + h_tmp + w_res


def actor_critic_forward(x, fused, a_dim, *, batch_tile=4096):
    """x: [B, s_dim] (f32 or bf16). fused: output of fuse_params.
    Returns (mu [B, a_dim], sigma [B, a_dim], values [B, 1]) in f32."""
    B, s_dim = x.shape
    wt, bt = fused["trunk_w"], fused["trunk_b"]
    wh, bh = fused["head_w"], fused["head_b"]
    out_rows = wh.shape[0]
    assert out_rows == 2 * a_dim + 1

    tb = _choose_batch_tile(B, batch_tile)
    grid = (pl.cdiv(B, tb),)

    flops = 2 * B * (s_dim * H_T_PAD + H_T_PAD * out_rows)
    bytes_accessed = (
        x.size * x.dtype.itemsize
        + wt.size * wt.dtype.itemsize + bt.size * bt.dtype.itemsize
        + wh.size * wh.dtype.itemsize + bh.size * bh.dtype.itemsize
        + B * out_rows * 4
    )
    vmem_limit = int(min(48 * 1024 * 1024,
                         max(24 * 1024 * 1024,
                             2 * _vmem_bytes_estimate(tb, s_dim, out_rows))))

    packed = pl.pallas_call(
        functools.partial(actor_critic_kernel, a_dim=a_dim),
        out_shape=jax.ShapeDtypeStruct((out_rows, B), jnp.float32),
        grid_spec=pltpu.PrefetchScalarGridSpec(
            num_scalar_prefetch=0,
            grid=grid,
            in_specs=[
                pl.BlockSpec((tb, s_dim), lambda i: (i, 0)),          # x: batch-blocked
                pl.BlockSpec((H_T_PAD, s_dim), lambda i: (0, 0)),     # trunk W^T: resident
                pl.BlockSpec((H_T_PAD, 1), lambda i: (0, 0)),         # trunk b:   resident
                pl.BlockSpec((out_rows, H_T_PAD), lambda i: (0, 0)),  # head W^T:  resident
                pl.BlockSpec((out_rows, 1), lambda i: (0, 0)),        # head b:    resident
            ],
            out_specs=pl.BlockSpec((out_rows, tb), lambda i: (0, i)), # lane-dense slab
        ),
        compiler_params=pltpu.CompilerParams(
            dimension_semantics=("parallel",),
            vmem_limit_bytes=vmem_limit,
        ),
        cost_estimate=pl.CostEstimate(
            flops=flops,
            transcendentals=3 * B * out_rows,   # tanh + exp + log per useful output
            bytes_accessed=bytes_accessed,
        ),
    )(x, wt, bt, wh, bh)

    # Only the first B columns are valid (trailing partial blocks are clamped);
    # slicing rows of the exact (out_rows, B) array is always safe.
    mu = packed[:a_dim, :].T
    sigma = packed[a_dim:2 * a_dim, :].T
    values = packed[2 * a_dim:2 * a_dim + 1, :].T
    return mu, sigma, values


def init_params(key, s_dim, a_dim):
    """Matches set_init(): normal(0, 0.001) weights, zero biases.
    Weights stored as [in, out]; biases as [1, out]."""
    ks = jax.random.split(key, 5)
    std = 0.001

    def w(k, fan_in, fan_out):
        return (std * jax.random.normal(k, (fan_in, fan_out))).astype(jnp.float32)

    return {
        "a1_w": w(ks[0], s_dim, H_A), "a1_b": jnp.zeros((1, H_A), jnp.float32),
        "mu_w": w(ks[1], H_A, a_dim), "mu_b": jnp.zeros((1, a_dim), jnp.float32),
        "sg_w": w(ks[2], H_A, a_dim), "sg_b": jnp.zeros((1, a_dim), jnp.float32),
        "c1_w": w(ks[3], s_dim, H_C), "c1_b": jnp.zeros((1, H_C), jnp.float32),
        "v_w":  w(ks[4], H_C, 1),     "v_b":  jnp.zeros((1, 1), jnp.float32),
    }


def reference_forward(x, params):
    """Pure-JAX f32 reference reproducing the PyTorch semantics (unfused)."""
    a1 = jnp.clip(x @ params["a1_w"] + params["a1_b"], 0.0, 6.0)
    mu = 180.0 * jnp.tanh(a1 @ params["mu_w"] + params["mu_b"])
    sigma = jax.nn.softplus(a1 @ params["sg_w"] + params["sg_b"]) + 0.001
    c1 = jnp.clip(x @ params["c1_w"] + params["c1_b"], 0.0, 6.0)
    values = c1 @ params["v_w"] + params["v_b"]
    return mu, sigma, values


if __name__ == "__main__":
    s_dim, a_dim, batch = 8, 4, 2
    key = jax.random.PRNGKey(0)
    kx, kp = jax.random.split(key)

    x = jax.random.normal(kx, (batch, s_dim), dtype=jnp.float32)
    params = init_params(kp, s_dim, a_dim)
    fused = fuse_params(params, a_dim)

    mu, sigma, values = actor_critic_forward(x, fused, a_dim)
    jax.block_until_ready((mu, sigma, values))

    mu_r, sigma_r, values_r = reference_forward(x, params)
    assert mu.shape == (batch, a_dim)
    assert sigma.shape == (batch, a_dim)
    assert values.shape == (batch, 1)
    # f32 weights / f32 accumulation end-to-end: parity with the f32 reference
    # is tight; tolerance kept modest to absorb MXU-pass accumulation-order
    # differences between the fused and unfused matmuls.
    assert jnp.allclose(mu, mu_r, atol=1e-3, rtol=1e-3)
    assert jnp.allclose(sigma, sigma_r, atol=1e-3, rtol=1e-3)
    assert jnp.allclose(values, values_r, atol=1e-3, rtol=1e-3)

    print("KERNEL_OK")
</pallas_src>

<mosaic_0001>
module attributes {stable_mosaic.version = 11 : i64} {
  func.func @actor_critic_kernel(%arg0: i32, %arg1: memref<2x8xf32, #tpu.memory_space<vmem>>, %arg2: memref<384x8xf32, #tpu.memory_space<vmem>>, %arg3: memref<384x1xf32, #tpu.memory_space<vmem>>, %arg4: memref<9x384xf32, #tpu.memory_space<vmem>>, %arg5: memref<9x1xf32, #tpu.memory_space<vmem>>, %arg6: memref<9x2xf32, #tpu.memory_space<vmem>>) attributes {dimension_semantics = [#tpu.dimension_semantics<parallel>], iteration_bounds = array<i64: 1>, scalar_prefetch = 0 : i64, scratch_operands = 0 : i64, tpu.core_type = #tpu.core_type<tc>, window_params = [{transform_indices = @transform_0, window_bounds = array<i64: 2, 8>}, {pipeline_mode = #tpu.pipeline_mode<synchronous>, transform_indices = @transform_1, window_bounds = array<i64: 384, 8>}, {pipeline_mode = #tpu.pipeline_mode<synchronous>, transform_indices = @transform_2, window_bounds = array<i64: 384, 1>}, {pipeline_mode = #tpu.pipeline_mode<synchronous>, transform_indices = @transform_3, window_bounds = array<i64: 9, 384>}, {pipeline_mode = #tpu.pipeline_mode<synchronous>, transform_indices = @transform_4, window_bounds = array<i64: 9, 1>}, {transform_indices = @transform_5, window_bounds = array<i64: 9, 2>}]} {
    %c0 = arith.constant 0 : index
    %c0_0 = arith.constant 0 : index
    %0 = vector.load %arg1[%c0, %c0_0] : memref<2x8xf32, #tpu.memory_space<vmem>>, vector<2x8xf32>
    %c0_1 = arith.constant 0 : index
    %c0_2 = arith.constant 0 : index
    %1 = vector.load %arg2[%c0_1, %c0_2] : memref<384x8xf32, #tpu.memory_space<vmem>>, vector<384x8xf32>
    %cst = arith.constant dense<0.000000e+00> : vector<384x2xf32>
    %2 = tpu.matmul %1, %0, %cst {dimension_numbers = #tpu.dot_dimension_numbers<[1], [1], [0], [0], [0, 0, 1, 0], [], []>} : vector<384x8xf32>, vector<2x8xf32>, vector<384x2xf32> -> vector<384x2xf32>
    %c0_3 = arith.constant 0 : index
    %c0_4 = arith.constant 0 : index
    %3 = vector.load %arg3[%c0_3, %c0_4] : memref<384x1xf32, #tpu.memory_space<vmem>>, vector<384x1xf32>
    %4 = vector.broadcast %3 : vector<384x1xf32> to vector<384x2xf32>
    %5 = arith.addf %2, %4 : vector<384x2xf32>
    %cst_5 = arith.constant 0.000000e+00 : f32
    %cst_6 = arith.constant 6.000000e+00 : f32
    %6 = vector.broadcast %cst_5 : f32 to vector<384x2xf32>
    %7 = arith.maximumf %6, %5 : vector<384x2xf32>
    %8 = vector.broadcast %cst_6 : f32 to vector<384x2xf32>
    %9 = arith.minimumf %8, %7 : vector<384x2xf32>
    %c0_7 = arith.constant 0 : index
    %c0_8 = arith.constant 0 : index
    %10 = vector.load %arg4[%c0_7, %c0_8] : memref<9x384xf32, #tpu.memory_space<vmem>>, vector<9x384xf32>
    %cst_9 = arith.constant dense<0.000000e+00> : vector<9x2xf32>
    %11 = tpu.matmul %10, %9, %cst_9 {dimension_numbers = #tpu.dot_dimension_numbers<[1], [0], [0], [1], [0, 0, 1, 1], [], []>} : vector<9x384xf32>, vector<384x2xf32>, vector<9x2xf32> -> vector<9x2xf32>
    %c0_10 = arith.constant 0 : index
    %c0_11 = arith.constant 0 : index
    %12 = vector.load %arg5[%c0_10, %c0_11] : memref<9x1xf32, #tpu.memory_space<vmem>>, vector<9x1xf32>
    %13 = vector.broadcast %12 : vector<9x1xf32> to vector<9x2xf32>
    %14 = arith.addf %11, %13 : vector<9x2xf32>
    %15 = tpu.iota {dimensions = array<i32: 0>} : vector<9x2xi32>
    %16 = math.tanh %14 : vector<9x2xf32>
    %cst_12 = arith.constant 1.800000e+02 : f32
    %17 = vector.broadcast %cst_12 : f32 to vector<9x2xf32>
    %18 = arith.mulf %17, %16 : vector<9x2xf32>
    %cst_13 = arith.constant 0.000000e+00 : f32
    %19 = vector.broadcast %cst_13 : f32 to vector<9x2xf32>
    %20 = arith.maximumf %19, %14 : vector<9x2xf32>
    %21 = vector.broadcast %cst_13 : f32 to vector<9x2xf32>
    %22 = arith.subf %21, %14 : vector<9x2xf32>
    %23 = arith.cmpf one, %22, %22 : vector<9x2xf32>
    %24 = vector.broadcast %cst_13 : f32 to vector<9x2xf32>
    %25 = arith.addf %24, %14 : vector<9x2xf32>
    %26 = math.absf %22 : vector<9x2xf32>
    %cst_14 = arith.constant 0.000000e+00 : f32
    %27 = vector.broadcast %cst_14 : f32 to vector<9x2xf32>
    %28 = arith.subf %27, %26 : vector<9x2xf32>
    %29 = math.exp %28 : vector<9x2xf32>
    %30 = math.log1p %29 : vector<9x2xf32>
    %31 = arith.addf %20, %30 : vector<9x2xf32>
    %32 = arith.select %23, %25, %31 : vector<9x2xi1>, vector<9x2xf32>
    %cst_15 = arith.constant 1.000000e-03 : f32
    %33 = vector.broadcast %cst_15 : f32 to vector<9x2xf32>
    %34 = arith.addf %32, %33 : vector<9x2xf32>
    %c4_i32 = arith.constant 4 : i32
    %35 = vector.broadcast %c4_i32 : i32 to vector<9x2xi32>
    %36 = arith.cmpi slt, %15, %35 : vector<9x2xi32>
    %c8_i32 = arith.constant 8 : i32
    %37 = vector.broadcast %c8_i32 : i32 to vector<9x2xi32>
    %38 = arith.cmpi slt, %15, %37 : vector<9x2xi32>
    %39 = arith.select %38, %34, %14 : vector<9x2xi1>, vector<9x2xf32>
    %40 = arith.select %36, %18, %39 : vector<9x2xi1>, vector<9x2xf32>
    %c0_16 = arith.constant 0 : index
    %c0_17 = arith.constant 0 : index
    %41 = vector.load %arg6[%c0_16, %c0_17] : memref<9x2xf32, #tpu.memory_space<vmem>>, vector<9x2xf32>
    tpu.vector_store %arg6[%c0_16, %c0_17], %40 {strides = array<i32>} : memref<9x2xf32, #tpu.memory_space<vmem>>, vector<9x2xf32>,
    return
  }
  func.func @transform_0(%arg0: i32) -> (i32, i32) {
    %c0_i32 = arith.constant 0 : i32
    %c0_i32_0 = arith.constant 0 : i32
    return %arg0, %c0_i32 : i32, i32
  }
  func.func @transform_1(%arg0: i32) -> (i32, i32) {
    %c0_i32 = arith.constant 0 : i32
    %c0_i32_0 = arith.constant 0 : i32
    %c0_i32_1 = arith.constant 0 : i32
    return %c0_i32, %c0_i32_0 : i32, i32
  }
  func.func @transform_2(%arg0: i32) -> (i32, i32) {
    %c0_i32 = arith.constant 0 : i32
    %c0_i32_0 = arith.constant 0 : i32
    %c0_i32_1 = arith.constant 0 : i32
    return %c0_i32, %c0_i32_0 : i32, i32
  }
  func.func @transform_3(%arg0: i32) -> (i32, i32) {
    %c0_i32 = arith.constant 0 : i32
    %c0_i32_0 = arith.constant 0 : i32
    %c0_i32_1 = arith.constant 0 : i32
    return %c0_i32, %c0_i32_0 : i32, i32
  }
  func.func @transform_4(%arg0: i32) -> (i32, i32) {
    %c0_i32 = arith.constant 0 : i32
    %c0_i32_0 = arith.constant 0 : i32
    %c0_i32_1 = arith.constant 0 : i32
    return %c0_i32, %c0_i32_0 : i32, i32
  }
  func.func @transform_5(%arg0: i32) -> (i32, i32) {
    %c0_i32 = arith.constant 0 : i32
    %c0_i32_0 = arith.constant 0 : i32
    return %c0_i32, %arg0 : i32, i32
  }
}

</mosaic_0001>

<bundles_post_ra>
// kernel: tpu_custom_call.1
= control target key start
LH: loop header
LB: loop body
LE: loop exit
PB: predicated region body
PF: predicated region fallthrough
CT: control target
= control target key end

     0   :  { %v974_v0 = vmov 0   ;;  %vm357_vm0 = vcmask 64512   ;;  %vm906_vm1 = vcmask 8192   ;;  %vm904_vm5 = vcmask 15360   ;;  %s1531_s2 = inlined_call_operand.vmem [shape: f32[384,1], index: 2, kind: input, shape index: {}]   ;;  %s1532_s0 = inlined_call_operand.vmem [shape: f32[2,8], index: 0, kind: input, shape index: {}]   ;;  %s1533_s1 = inlined_call_operand.vmem [shape: f32[384,8], index: 1, kind: input, shape index: {}]   ;;  %s1534_s4 = inlined_call_operand.vmem [shape: f32[9,1], index: 4, kind: input, shape index: {}]   ;;  %s1535_s3 = inlined_call_operand.vmem [shape: f32[9,384], index: 3, kind: input, shape index: {}]   ;;  %s1536_s5 = inlined_call_operand.vmem [shape: f32[9,2], index: 5, kind: output, shape index: {}]  }
   0x1   :  { %967 = vset.pattern.permute.xlu2 %v974_v0  ;;  %966 = vset.pattern.permute.xlu1 %v974_v0  ;;  %v73_v1 = vld [vmem:[%s1531_s2 + $0x20] sm:$0xff]  ;;  %v71_v2 = vld [vmem:[%s1531_s2 + $0x10] sm:$0xff]  ;;  %v50_v7 = vld [vmem:[%s1533_s1 + $0xe8] sm:$0xff] }
   0x2   :  { %v69_v3 = vld [vmem:[%s1531_s2] sm:$0xff]  ;;  %965 = vset.pattern.permute.xlu0 %v974_v0  ;;  %139 = vperm.xlu2 %967, %v73_v1   ;;  %v74_v8 = vld [vmem:[%s1531_s2 + $0x28] sm:$0xff]  ;;  %v72_v9 = vld [vmem:[%s1531_s2 + $0x18] sm:$0xff] }
   0x3   :  { %v20_v4 = vld [vmem:[%s1532_s0] sm:$0x3]  ;;  %129 = vperm.xlu1 %966, %v71_v2   ;;  %119 = vperm.xlu0 %965, %v69_v3   ;;  %v70_v10 = vld [vmem:[%s1531_s2 + $0x8] sm:$0xff]  ;;  %v51_v14 = vld [vmem:[%s1533_s1 + $0xf0] sm:$0xff] }
   0x4   :  { %912 = vmatpush.xpose.msk.msra.mxu0 %vm357_vm0, %v20_v4  ;;  %961 = vmatpush.xpose.msk.msra.mxu1 %vm357_vm0, %v20_v4  ;;  %v21_v5 = vld [vmem:[%s1533_s1] sm:$0xff]  ;;  %v62_v11 = vld [vmem:[%s1533_s1 + $0x148] sm:$0xff]  ;;  %v63_v16 = vld [vmem:[%s1533_s1 + $0x150] sm:$0xff] }
   0x5   :  { %v37_v6 = vld [vmem:[%s1533_s1 + $0x80] sm:$0xff]  ;;  %962 = vmatpush.xpose.msk.msra.mxu2 %vm357_vm0, %v20_v4  ;;  %963 = vmatpush.xpose.msk.msra.mxu3 %vm357_vm0, %v20_v4  ;;  %v22_v12 = vld [vmem:[%s1533_s1 + $0x8] sm:$0xff]  ;;  %v76_v17 = vld [vmem:[%s1531_s2 + $0x38] sm:$0xff] }
   0x6   :  { %v38_v13 = vld [vmem:[%s1533_s1 + $0x88] sm:$0xff]  ;;  %v77_v15 = vld [vmem:[%s1531_s2 + $0x40] sm:$0xff]  ;;  %v75_v18 = vld [vmem:[%s1531_s2 + $0x30] sm:$0xff] }
   0x7   :  { %913 = vmatmul.msk.f32.vlgmr.msra.gmra.mxu0 %vm357_vm0, %v21_v5  ;;  %929 = vmatmul.msk.f32.vlgmr.msra.gmra.mxu1 %vm357_vm0, %v37_v6  ;;  %v23_v19 = vld [vmem:[%s1533_s1 + $0x10] sm:$0xff]  ;;  %v52_v21 = vld [vmem:[%s1533_s1 + $0xf8] sm:$0xff]  ;;  %v78_v25 = vld [vmem:[%s1531_s2 + $0x48] sm:$0xff] }
   0x8   :  { %942 = vmatmul.msk.f32.vlgmr.msra.gmra.mxu2 %vm357_vm0, %v50_v7  ;;  %954 = vmatmul.msk.f32.vlgmr.msra.gmra.mxu3 %vm357_vm0, %v62_v11  ;;  %v39_v20 = vld [vmem:[%s1533_s1 + $0x90] sm:$0xff]  ;;  %v64_v23 = vld [vmem:[%s1533_s1 + $0x158] sm:$0xff]  ;;  %v53_v28 = vld [vmem:[%s1533_s1 + $0x100] sm:$0xff] }
   0x9   :  { %v99_v22 = vld [vmem:[%s1531_s2 + $0xf0] sm:$0xff]  ;;  %v100_v24 = vld [vmem:[%s1531_s2 + $0xf8] sm:$0xff]  ;;  %v98_v29 = vld [vmem:[%s1531_s2 + $0xe8] sm:$0xff] }
   0xa   :  { %144 = vperm.xlu2 %967, %v74_v8   ;;  %v24_v26 = vld [vmem:[%s1533_s1 + $0x18] sm:$0xff]  ;;  %v65_v30 = vld [vmem:[%s1533_s1 + $0x160] sm:$0xff]  ;;  %v54_v35 = vld [vmem:[%s1533_s1 + $0x108] sm:$0xff] }
   0xb   :  { %134 = vperm.xlu1 %966, %v72_v9   ;;  %124 = vperm.xlu0 %965, %v70_v10   ;;  %v40_v27 = vld [vmem:[%s1533_s1 + $0x98] sm:$0xff]  ;;  %v25_v33 = vld [vmem:[%s1533_s1 + $0x20] sm:$0xff]  ;;  %v66_v37 = vld [vmem:[%s1533_s1 + $0x168] sm:$0xff] }
   0xc   :  { %v84_v31 = vld [vmem:[%s1531_s2 + $0x78] sm:$0xff]  ;;  %v41_v34 = vld [vmem:[%s1533_s1 + $0xa0] sm:$0xff]  ;;  %v83_v38 = vld [vmem:[%s1531_s2 + $0x70] sm:$0xff] }
   0xd   :  { %v116_v32 = vld [vmem:[%s1531_s2 + $0x178] sm:$0xff]  ;;  %v97_v36 = vld [vmem:[%s1531_s2 + $0xe0] sm:$0xff]  ;;  %v115_v39 = vld [vmem:[%s1531_s2 + $0x170] sm:$0xff] }
   0xe   :  { %v26_v40 = vld [vmem:[%s1533_s1 + $0x28] sm:$0xff]  ;;  %v55_v42 = vld [vmem:[%s1533_s1 + $0x110] sm:$0xff]  ;;  %v96_v43 = vld [vmem:[%s1531_s2 + $0xd8] sm:$0xff] }
   0xf   :  { %914 = vmatmul.msk.f32.gmra.mxu0 %vm357_vm0, %v22_v12  ;;  %930 = vmatmul.msk.f32.gmra.mxu1 %vm357_vm0, %v38_v13  ;;  %v42_v41 = vld [vmem:[%s1533_s1 + $0xa8] sm:$0xff]  ;;  %v67_v44 = vld [vmem:[%s1533_s1 + $0x170] sm:$0xff]  ;;  %v56_v49 = vld [vmem:[%s1533_s1 + $0x118] sm:$0xff] }
  0x10   :  { %943 = vmatmul.msk.f32.gmra.mxu2 %vm357_vm0, %v51_v14  ;;  %955 = vmatmul.msk.f32.gmra.mxu3 %vm357_vm0, %v63_v16  ;;  %v82_v45 = vld [vmem:[%s1531_s2 + $0x68] sm:$0xff]  ;;  %v27_v47 = vld [vmem:[%s1533_s1 + $0x30] sm:$0xff]  ;;  %v68_v51 = vld [vmem:[%s1533_s1 + $0x178] sm:$0xff] }
  0x11   :  { %v114_v46 = vld [vmem:[%s1531_s2 + $0x168] sm:$0xff]  ;;  %v43_v48 = vld [vmem:[%s1533_s1 + $0xb0] sm:$0xff]  ;;  %v81_v52 = vld [vmem:[%s1531_s2 + $0x60] sm:$0xff] }
  0x12   :  { %159 = vperm.xlu2 %967, %v77_v15   ;;  %v95_v50 = vld [vmem:[%s1531_s2 + $0xd0] sm:$0xff]  ;;  %v113_v53 = vld [vmem:[%s1531_s2 + $0x160] sm:$0xff]  ;;  %v28_v54 = vld [vmem:[%s1533_s1 + $0x38] sm:$0xff] }
  0x13   :  { %154 = vperm.xlu1 %966, %v76_v17   ;;  %149 = vperm.xlu0 %965, %v75_v18   ;;  %v44_v55 = vld [vmem:[%s1533_s1 + $0xb8] sm:$0xff]  ;;  %v57_v56 = vld [vmem:[%s1533_s1 + $0x120] sm:$0xff]  ;;  %v94_v57 = vld [vmem:[%s1531_s2 + $0xc8] sm:$0xff] }
  0x14   :  { %v80_v58 = vld [vmem:[%s1531_s2 + $0x58] sm:$0xff]  ;;  %v29_v60 = vld [vmem:[%s1533_s1 + $0x40] sm:$0xff]  ;;  %v58_v62 = vld [vmem:[%s1533_s1 + $0x128] sm:$0xff] }
  0x15   :  { %v112_v59 = vld [vmem:[%s1531_s2 + $0x158] sm:$0xff]  ;;  %v45_v61 = vld [vmem:[%s1533_s1 + $0xc0] sm:$0xff]  ;;  %v79_v0 = vld [vmem:[%s1531_s2 + $0x50] sm:$0xff] }
  0x16   :  { %v93_v63 = vld [vmem:[%s1531_s2 + $0xc0] sm:$0xff]  ;;  %v111_v1 = vld [vmem:[%s1531_s2 + $0x150] sm:$0xff]  ;;  %v30_v2 = vld [vmem:[%s1533_s1 + $0x48] sm:$0xff] }
  0x17   :  { %915 = vmatmul.msk.f32.gmra.mxu0 %vm357_vm0, %v23_v19  ;;  %931 = vmatmul.msk.f32.gmra.mxu1 %vm357_vm0, %v39_v20  ;;  %v46_v3 = vld [vmem:[%s1533_s1 + $0xc8] sm:$0xff]  ;;  %v59_v4 = vld [vmem:[%s1533_s1 + $0x130] sm:$0xff]  ;;  %v109_v5 = vld [vmem:[%s1531_s2 + $0x140] sm:$0xff] }
  0x18   :  { %944 = vmatmul.msk.f32.gmra.mxu2 %vm357_vm0, %v52_v21  ;;  %956 = vmatmul.msk.f32.gmra.mxu3 %vm357_vm0, %v64_v23  ;;  %v92_v6 = vld [vmem:[%s1531_s2 + $0xb8] sm:$0xff]  ;;  %v110_v7 = vld [vmem:[%s1531_s2 + $0x148] sm:$0xff]  ;;  %v31_v8 = vld [vmem:[%s1533_s1 + $0x50] sm:$0xff] }
  0x19   :  { %v47_v9 = vld [vmem:[%s1533_s1 + $0xd0] sm:$0xff]  ;;  %v60_v10 = vld [vmem:[%s1533_s1 + $0x138] sm:$0xff]  ;;  %v90_v11 = vld [vmem:[%s1531_s2 + $0xa8] sm:$0xff] }
  0x1a   :  { %269 = vperm.xlu2 %967, %v99_v22   ;;  %v108_v12 = vld [vmem:[%s1531_s2 + $0x138] sm:$0xff]  ;;  %v91_v13 = vld [vmem:[%s1531_s2 + $0xb0] sm:$0xff]  ;;  %v61_v17 = vld [vmem:[%s1533_s1 + $0x140] sm:$0xff] }
  0x1b   :  { %274 = vperm.xlu1 %966, %v100_v24   ;;  %164 = vperm.xlu0 %965, %v78_v25   ;;  %v32_v15 = vld [vmem:[%s1533_s1 + $0x58] sm:$0xff]  ;;  %v106_v18 = vld [vmem:[%s1531_s2 + $0x128] sm:$0xff]  ;;  %v89_v19 = vld [vmem:[%s1531_s2 + $0xa0] sm:$0xff] }
  0x1c   :  { %v48_v16 = vld [vmem:[%s1533_s1 + $0xd8] sm:$0xff]  ;;  %v107_v20 = vld [vmem:[%s1531_s2 + $0x130] sm:$0xff]  ;;  %v33_v22 = vld [vmem:[%s1533_s1 + $0x60] sm:$0xff] }
  0x1d   :  { %v49_v23 = vld [vmem:[%s1533_s1 + $0xe0] sm:$0xff]  ;;  %v87_v24 = vld [vmem:[%s1531_s2 + $0x90] sm:$0xff] }
  0x1e   :  { %v105_v25 = vld [vmem:[%s1531_s2 + $0x120] sm:$0xff] }
  0x1f   :  { %916 = vmatmul.msk.f32.gmra.mxu0 %vm357_vm0, %v24_v26  ;;  %932 = vmatmul.msk.f32.gmra.mxu1 %vm357_vm0, %v40_v27  ;;  %v88_v26 = vld [vmem:[%s1531_s2 + $0x98] sm:$0xff] }
  0x20   :  { %945 = vmatmul.msk.f32.gmra.mxu2 %vm357_vm0, %v53_v28  ;;  %957 = vmatmul.msk.f32.gmra.mxu3 %vm357_vm0, %v65_v30  ;;  %v34_v28 = vld [vmem:[%s1533_s1 + $0x68] sm:$0xff] }
  0x21   :  { %v86_v30 = vld [vmem:[%s1531_s2 + $0x88] sm:$0xff] }
  0x22   :  { %264 = vperm.xlu2 %967, %v98_v29   ;;  %v103_v29 = vld [vmem:[%s1531_s2 + $0x110] sm:$0xff] }
  0x23   :  { %194 = vperm.xlu1 %966, %v84_v31   ;;  %354 = vperm.xlu0 %965, %v116_v32   ;;  %v104_v31 = vld [vmem:[%s1531_s2 + $0x118] sm:$0xff] }
  0x27   :  { %917 = vmatmul.msk.f32.gmra.mxu0 %vm357_vm0, %v25_v33  ;;  %933 = vmatmul.msk.f32.gmra.mxu1 %vm357_vm0, %v41_v34  ;;  %v35_v33 = vld [vmem:[%s1533_s1 + $0x70] sm:$0xff] }
  0x28   :  { %946 = vmatmul.msk.f32.gmra.mxu2 %vm357_vm0, %v54_v35  ;;  %958 = vmatmul.msk.f32.gmra.mxu3 %vm357_vm0, %v66_v37  ;;  %v102_v37 = vld [vmem:[%s1531_s2 + $0x108] sm:$0xff] }
  0x2a   :  { %259 = vperm.xlu2 %967, %v97_v36   ;;  %v101_v36 = vld [vmem:[%s1531_s2 + $0x100] sm:$0xff] }
  0x2b   :  { %189 = vperm.xlu1 %966, %v83_v38   ;;  %349 = vperm.xlu0 %965, %v115_v39   ;;  %v85_v38 = vld [vmem:[%s1531_s2 + $0x80] sm:$0xff]  ;;  %v36_v39 = vld [vmem:[%s1533_s1 + $0x78] sm:$0xff] }
  0x2f   :  { %918 = vmatmul.msk.f32.gmra.mxu0 %vm357_vm0, %v26_v40  ;;  %934 = vmatmul.msk.f32.gmra.mxu1 %vm357_vm0, %v42_v41 }
  0x30   :  { %947 = vmatmul.msk.f32.gmra.mxu2 %vm357_vm0, %v55_v42  ;;  %959 = vmatmul.msk.f32.gmra.mxu3 %vm357_vm0, %v67_v44  ;;  %v768_v44 = vld [vmem:[%s1534_s4] sm:$0xff] }
  0x32   :  { %254 = vperm.xlu2 %967, %v96_v43   ;;  %v769_v43 = vld [vmem:[%s1534_s4 + $0x8] sm:$0x1] }
  0x33   :  { %184 = vperm.xlu1 %966, %v82_v45   ;;  %344 = vperm.xlu0 %965, %v114_v46  }
  0x37   :  { %919 = vmatmul.msk.f32.gmra.mxu0 %vm357_vm0, %v27_v47  ;;  %935 = vmatmul.msk.f32.gmra.mxu1 %vm357_vm0, %v43_v48 }
  0x38   :  { %948 = vmatmul.msk.f32.gmra.mxu2 %vm357_vm0, %v56_v49  ;;  %960 = vmatmul.msk.f32.gmra.mxu3 %vm357_vm0, %v68_v51 }
  0x3a   :  { %249 = vperm.xlu2 %967, %v95_v50  }
  0x3b   :  { %179 = vperm.xlu1 %966, %v81_v52   ;;  %339 = vperm.xlu0 %965, %v113_v53  }
  0x3f   :  { %920 = vmatmul.msk.f32.gmra.mxu0 %vm357_vm0, %v28_v54  ;;  %936 = vmatmul.msk.f32.gmra.mxu1 %vm357_vm0, %v44_v55 }
  0x40   :  { %949 = vmatmul.msk.f32.gmra.mxu2 %vm357_vm0, %v57_v56 }
  0x42   :  { %244 = vperm.xlu2 %967, %v94_v57  }
  0x43   :  { %174 = vperm.xlu1 %966, %v80_v58   ;;  %334 = vperm.xlu0 %965, %v112_v59  }
  0x47   :  { %921 = vmatmul.msk.f32.gmra.mxu0 %vm357_vm0, %v29_v60  ;;  %937 = vmatmul.msk.f32.gmra.mxu1 %vm357_vm0, %v45_v61 }
  0x48   :  { %950 = vmatmul.msk.f32.gmra.mxu2 %vm357_vm0, %v58_v62 }
  0x4a   :  { %239 = vperm.xlu2 %967, %v93_v63  }
  0x4b   :  { %169 = vperm.xlu1 %966, %v79_v0   ;;  %329 = vperm.xlu0 %965, %v111_v1  }
  0x4f   :  { %922 = vmatmul.msk.f32.gmra.mxu0 %vm357_vm0, %v30_v2  ;;  %938 = vmatmul.msk.f32.gmra.mxu1 %vm357_vm0, %v46_v3 }
  0x50   :  { %951 = vmatmul.msk.f32.gmra.mxu2 %vm357_vm0, %v59_v4 }
  0x52   :  { %319 = vperm.xlu2 %967, %v109_v5  }
  0x53   :  { %234 = vperm.xlu1 %966, %v92_v6   ;;  %324 = vperm.xlu0 %965, %v110_v7  }
  0x57   :  { %923 = vmatmul.msk.f32.gmra.mxu0 %vm357_vm0, %v31_v8  ;;  %939 = vmatmul.msk.f32.gmra.mxu1 %vm357_vm0, %v47_v9 }
  0x58   :  { %952 = vmatmul.msk.f32.gmra.mxu2 %vm357_vm0, %v60_v10 }
  0x5a   :  { %224 = vperm.xlu2 %967, %v90_v11  }
  0x5b   :  { %314 = vperm.xlu1 %966, %v108_v12   ;;  %229 = vperm.xlu0 %965, %v91_v13  }
  0x5c   :  { %v1280_v14 = vpop.permute.xlu2 %139 }
  0x5d   :  { %1537 = vst [vmem:[#allocation2_spill] sm:$0xff] %v1280_v14 }
  0x5f   :  { %924 = vmatmul.msk.f32.gmra.mxu0 %vm357_vm0, %v32_v15  ;;  %940 = vmatmul.msk.f32.gmra.mxu1 %vm357_vm0, %v48_v16 }
  0x60   :  { %953 = vmatmul.msk.f32.gmra.mxu2 %vm357_vm0, %v61_v17 }
  0x62   :  { %304 = vperm.xlu2 %967, %v106_v18  }
  0x63   :  { %219 = vperm.xlu1 %966, %v89_v19   ;;  %309 = vperm.xlu0 %965, %v107_v20  }
  0x64   :  { %v1303_v21 = vpop.permute.xlu2 %144 }
  0x67   :  { %925 = vmatmul.msk.f32.gmra.mxu0 %vm357_vm0, %v33_v22  ;;  %941 = vmatmul.msk.f32.gmra.mxu1 %vm357_vm0, %v49_v23 }
  0x6a   :  { %209 = vperm.xlu2 %967, %v87_v24  }
  0x6b   :  { %299 = vperm.xlu1 %966, %v105_v25   ;;  %214 = vperm.xlu0 %965, %v88_v26  }
  0x6c   :  { %v1322_v27 = vpop.permute.xlu2 %159 }
  0x6f   :  { %926 = vmatmul.msk.f32.gmra.mxu0 %vm357_vm0, %v34_v28 }
  0x72   :  { %289 = vperm.xlu2 %967, %v103_v29  }
  0x73   :  { %204 = vperm.xlu1 %966, %v86_v30   ;;  %294 = vperm.xlu0 %965, %v104_v31  }
  0x74   :  { %v270_v32 = vpop.permute.xlu2 %269 }
  0x75   :  { %v130_v34 = vpop.permute.xlu1 %129  ;;  %v120_v35 = vpop.permute.xlu0 %119 }
  0x77   :  { %927 = vmatmul.msk.f32.gmra.mxu0 %vm357_vm0, %v35_v33 }
  0x7a   :  { %279 = vperm.xlu2 %967, %v101_v36  }
  0x7b   :  { %284 = vperm.xlu1 %966, %v102_v37   ;;  %199 = vperm.xlu0 %965, %v85_v38  }
  0x7c   :  { %v265_v42 = vpop.permute.xlu2 %264 }
  0x7d   :  { %v135_v40 = vpop.permute.xlu1 %134  ;;  %v125_v41 = vpop.permute.xlu0 %124 }
  0x7f   :  { %928 = vmatmul.msk.f32.gmra.mxu0 %vm357_vm0, %v36_v39 }
  0x83   :  { %777 = vperm.xlu1 %966, %v769_v43   ;;  %772 = vperm.xlu0 %965, %v768_v44  }
  0x84   :  { %v522_v45 = vpop.f32.mrf.mxu0  ;;  %v1360_v46 = vpop.f32.mrf.mxu1 }
  0x85   :  { %v1362_v47 = vadd.f32 %v522_v45, %v120_v35  ;;  %v1364_v48 = vpop.permute.xlu1 %154  ;;  %v150_v49 = vpop.permute.xlu0 %149 }
  0x86   :  { %v1366_v50 = vpop.permute.xlu2 %259 }
  0x87   :  { %1538 = vst [vmem:[#allocation3_spill] sm:$0xff] %v1362_v47 }
  0x8b   :  { %v609_v51 = vpop.f32.mrf.mxu2  ;;  %v1374_v57 = vpop.f32.mrf.mxu3 }
  0x8c   :  { %v525_v52 = vpop.f32.mrf.mxu0  ;;  %v1368_v53 = vpop.f32.mrf.mxu1  ;;  %v610_v3 = vadd.f32 %v609_v51, %v265_v42 }
  0x8d   :  { %v1370_v54 = vadd.f32 %v525_v52, %v125_v41  ;;  %v275_v55 = vpop.permute.xlu1 %274  ;;  %v1372_v56 = vpop.permute.xlu0 %164 }
  0x8e   :  { %v1376_v58 = vpop.permute.xlu2 %254  ;;  %v695_v12 = vmax.f32 %v610_v3, 0.0 }
  0x8f   :  { %1539 = vst [vmem:[#allocation4_spill] sm:$0xff] %v1370_v54 }
  0x90   :  { %v743_v19 = vmin.f32 %v695_v12, 6.0 }
  0x93   :  { %v612_v59 = vpop.f32.mrf.mxu2  ;;  %v1384_v1 = vpop.f32.mrf.mxu3 }
  0x94   :  { %v528_v60 = vpop.f32.mrf.mxu0  ;;  %v1378_v61 = vpop.f32.mrf.mxu1  ;;  %v613_v2 = vadd.f32 %v612_v59, %v270_v32 }
  0x95   :  { %v1380_v62 = vadd.f32 %v528_v60, %v130_v34  ;;  %v1382_v63 = vpop.permute.xlu1 %194  ;;  %v355_v0 = vpop.permute.xlu0 %354 }
  0x96   :  { %v696_v5 = vmax.f32 %v613_v2, 0.0  ;;  %v1388_v9 = vpop.permute.xlu2 %249 }
  0x97   :  { %1540 = vst [vmem:[#allocation5_spill] sm:$0xff] %v1380_v62 }
  0x98   :  { %v744_v18 = vmin.f32 %v696_v5, 6.0 }
  0x9b   :  { %v615_v4 = vpop.f32.mrf.mxu2  ;;  %v651_v16 = vpop.f32.mrf.mxu3 }
  0x9c   :  { %v616_v6 = vadd.f32 %v615_v4, %v275_v55  ;;  %v531_v7 = vpop.f32.mrf.mxu0  ;;  %v1386_v8 = vpop.f32.mrf.mxu1 }
  0x9d   :  { %v1390_v10 = vadd.f32 %v531_v7, %v135_v40  ;;  %v1392_v11 = vpop.permute.xlu1 %189  ;;  %v350_v15 = vpop.permute.xlu0 %349 }
  0x9e   :  { %v697_v13 = vmax.f32 %v616_v6, 0.0  ;;  %v1402_v28 = vpop.permute.xlu2 %244 }
  0x9f   :  { %1541 = vst [vmem:[#allocation6_spill] sm:$0xff] %v1390_v10 }
  0xa0   :  { %v745_v17 = vmin.f32 %v697_v13, 6.0 }
  0xa2   :  { %803 = vmatpush.msrb.mxu2 %v745_v17 }
  0xa3   :  { %v1394_v20 = vpop.f32.mrf.mxu2  ;;  %v654_v26 = vpop.f32.mrf.mxu3 }
  0xa4   :  { %v1396_v22 = vpop.f32.mrf.mxu0  ;;  %v1398_v23 = vpop.f32.mrf.mxu1  ;;  %804 = vmatpush.msrb.mxu2 %v744_v18 }
  0xa5   :  { %1542 = vst [vmem:[#allocation7_spill] sm:$0xff] %v1396_v22  ;;  %v1400_v24 = vpop.permute.xlu1 %184  ;;  %v345_v25 = vpop.permute.xlu0 %344 }
  0xa6   :  { %805 = vmatpush.msrb.mxu2 %v743_v19  ;;  %v1412_v35 = vpop.permute.xlu2 %239 }
  0xab   :  { %v1404_v29 = vpop.f32.mrf.mxu2  ;;  %v657_v34 = vpop.f32.mrf.mxu3 }
  0xac   :  { %v1406_v30 = vpop.f32.mrf.mxu0  ;;  %v1408_v31 = vpop.f32.mrf.mxu1  ;;  %v658_v2 = vadd.f32 %v657_v34, %v345_v25 }
  0xad   :  { %1543 = vst [vmem:[#allocation8_spill] sm:$0xff] %v1406_v30  ;;  %v1410_v32 = vpop.permute.xlu1 %179  ;;  %v340_v33 = vpop.permute.xlu0 %339 }
  0xae   :  { %v1422_v43 = vpop.permute.xlu2 %319  ;;  %v655_v4 = vadd.f32 %v654_v26, %v340_v33  ;;  %v711_v13 = vmax.f32 %v658_v2, 0.0 }
  0xb0   :  { %v759_v33 = vmin.f32 %v711_v13, 6.0 }
  0xb3   :  { %v1414_v36 = vpop.f32.mrf.mxu2  ;;  %v660_v42 = vpop.f32.mrf.mxu3 }
  0xb4   :  { %v540_v37 = vpop.f32.mrf.mxu0  ;;  %v1416_v38 = vpop.f32.mrf.mxu1  ;;  %v661_v59 = vadd.f32 %v660_v42, %v350_v15 }
  0xb5   :  { %v1418_v39 = vadd.f32 %v540_v37, %v150_v49  ;;  %v1420_v40 = vpop.permute.xlu1 %174  ;;  %v335_v41 = vpop.permute.xlu0 %334  ;;  %v710_v37 = vmax.f32 %v655_v4, 0.0 }
  0xb6   :  { %v712_v5 = vmax.f32 %v661_v59, 0.0  ;;  %v652_v7 = vadd.f32 %v651_v16, %v335_v41 }
  0xb7   :  { %1544 = vst [vmem:[#allocation9_spill] sm:$0xff] %v1418_v39 }
  0xb8   :  { %v709_v26 = vmax.f32 %v652_v7, 0.0 }
  0xbb   :  { %v1424_v44 = vpop.f32.mrf.mxu2  ;;  %v663_v49 = vpop.f32.mrf.mxu3 }
  0xbc   :  { %v543_v45 = vpop.f32.mrf.mxu0  ;;  %v1426_v51 = vpop.f32.mrf.mxu1  ;;  %v664_v3 = vadd.f32 %v663_v49, %v355_v0  ;;  %v760_v0 = vmin.f32 %v712_v5, 6.0  ;;  %v757_v49 = vmin.f32 %v709_v26, 6.0 }
  0xbd   :  { %v1429_v52 = vadd.f32 %v543_v45, %v1364_v48  ;;  %v1431_v55 = vpop.permute.xlu1 %169  ;;  %v330_v60 = vpop.permute.xlu0 %329  ;;  %v758_v45 = vmin.f32 %v710_v37, 6.0 }
  0xbe   :  { %v713_v6 = vmax.f32 %v664_v3, 0.0  ;;  %v1437_v48 = vpop.permute.xlu2 %224  ;;  %v649_v15 = vadd.f32 %v1384_v1, %v330_v60 }
  0xbf   :  { %1545 = vst [vmem:[#allocation10_spill] sm:$0xff] %v1429_v52 }
  0xc0   :  { %v761_v17 = vmin.f32 %v713_v6, 6.0  ;;  %v708_v34 = vmax.f32 %v649_v15, 0.0 }
  0xc2   :  { %826 = vmatpush.msrb.mxu3 %v761_v17  ;;  %v756_v3 = vmin.f32 %v708_v34, 6.0 }
  0xc3   :  { %v1433_v12 = vpop.f32.mrf.mxu2 }
  0xc4   :  { %v1435_v18 = vpop.f32.mrf.mxu0  ;;  %v594_v19 = vpop.f32.mrf.mxu1  ;;  %827 = vmatpush.msrb.mxu3 %v760_v0 }
  0xc5   :  { %v1440_v42 = vpop.permute.xlu1 %234  ;;  %v325_v25 = vpop.permute.xlu0 %324 }
  0xc6   :  { %v646_v16 = vadd.f32 %v1374_v57, %v325_v25  ;;  %828 = vmatpush.msrb.mxu3 %v759_v33  ;;  %v305_v6 = vpop.permute.xlu2 %304 }
  0xc8   :  { %v707_v41 = vmax.f32 %v646_v16, 0.0  ;;  %829 = vmatpush.msrb.mxu3 %v758_v45 }
  0xca   :  { %830 = vmatpush.msrb.mxu3 %v757_v49  ;;  %v755_v4 = vmin.f32 %v707_v41, 6.0 }
  0xcb   :  { %v633_v59 = vpop.f32.mrf.mxu2 }
  0xcc   :  { %v1443_v2 = vpop.f32.mrf.mxu0  ;;  %v597_v1 = vpop.f32.mrf.mxu1  ;;  %831 = vmatpush.msrb.mxu3 %v756_v3  ;;  %v634_v22 = vadd.f32 %v633_v59, %v305_v6  ;;  %v592_v59 = vadd.f32 %v1426_v51, %v1440_v42 }
  0xcd   :  { %v315_v60 = vpop.permute.xlu1 %314  ;;  %v230_v5 = vpop.permute.xlu0 %229 }
  0xce   :  { %832 = vmatpush.msrb.mxu3 %v755_v4  ;;  %v1449_v15 = vpop.permute.xlu2 %209 }
  0xd3   :  { %v636_v57 = vpop.f32.mrf.mxu2 }
  0xd4   :  { %v1445_v7 = vpop.f32.mrf.mxu0  ;;  %v600_v13 = vpop.f32.mrf.mxu1 }
  0xd5   :  { %v1447_v17 = vpop.permute.xlu1 %219  ;;  %v310_v37 = vpop.permute.xlu0 %309  ;;  %v601_v62 = vadd.f32 %v600_v13, %v1388_v9  ;;  %v703_v13 = vmax.f32 %v634_v22, 0.0 }
  0xd6   :  { %v290_v41 = vpop.permute.xlu2 %289  ;;  %v637_v3 = vadd.f32 %v636_v57, %v310_v37 }
  0xd7   :  { %v692_v30 = vmax.f32 %v601_v62, 0.0  ;;  %v589_v62 = vadd.f32 %v1416_v38, %v230_v5  ;;  %v751_v42 = vmin.f32 %v703_v13, 6.0 }
  0xd8   :  { %v704_v57 = vmax.f32 %v637_v3, 0.0 }
  0xd9   :  { %v688_v5 = vmax.f32 %v589_v62, 0.0 }
  0xdb   :  { %v639_v0 = vpop.f32.mrf.mxu2 }
  0xdc   :  { %v1451_v25 = vpop.f32.mrf.mxu0  ;;  %v603_v26 = vpop.f32.mrf.mxu1  ;;  %v640_v34 = vadd.f32 %v639_v0, %v315_v60  ;;  %v598_v60 = vadd.f32 %v597_v1, %v1402_v28  ;;  %v625_v1 = vadd.f32 %v1414_v36, %v290_v41  ;;  %v689_v36 = vmax.f32 %v592_v59, 0.0 }
  0xdd   :  { %v300_v16 = vpop.permute.xlu1 %299  ;;  %v1453_v33 = vpop.permute.xlu0 %214  ;;  %v604_v45 = vadd.f32 %v603_v26, %v1376_v58 }
  0xde   :  { %v705_v14 = vmax.f32 %v640_v34, 0.0  ;;  %v691_v28 = vmax.f32 %v598_v60, 0.0  ;;  %v280_v22 = vpop.permute.xlu2 %279  ;;  %v700_v41 = vmax.f32 %v625_v1, 0.0 }
  0xdf   :  { %v693_v0 = vmax.f32 %v604_v45, 0.0  ;;  %v619_v45 = vadd.f32 %v1394_v20, %v280_v22 }
  0xe0   :  { %v739_v34 = vmin.f32 %v691_v28, 6.0 }
  0xe3   :  { %v642_v49 = vpop.f32.mrf.mxu2 }
  0xe4   :  { %v643_v4 = vadd.f32 %v642_v49, %v1422_v43  ;;  %v1457_v47 = vpop.f32.mrf.mxu0  ;;  %v606_v54 = vpop.f32.mrf.mxu1  ;;  %v631_v43 = vadd.f32 %v1433_v12, %v300_v16  ;;  %v595_v49 = vadd.f32 %v594_v19, %v1412_v35  ;;  %v752_v12 = vmin.f32 %v704_v57, 6.0 }
  0xe5   :  { %v607_v10 = vadd.f32 %v606_v54, %v1366_v50  ;;  %v1461_v39 = vpop.permute.xlu1 %204  ;;  %v295_v26 = vpop.permute.xlu0 %294  ;;  %v753_v54 = vmin.f32 %v705_v14, 6.0  ;;  %v740_v19 = vmin.f32 %v692_v30, 6.0  ;;  %v586_v16 = vadd.f32 %v1408_v31, %v1437_v48 }
  0xe6   :  { %v706_v52 = vmax.f32 %v643_v4, 0.0  ;;  %v628_v50 = vadd.f32 %v1424_v44, %v295_v26  ;;  %v702_v6 = vmax.f32 %v631_v43, 0.0  ;;  %v690_v35 = vmax.f32 %v595_v49, 0.0 }
  0xe7   :  { %v694_v58 = vmax.f32 %v607_v10, 0.0  ;;  %v741_v10 = vmin.f32 %v693_v0, 6.0  ;;  %v583_v30 = vadd.f32 %v1398_v23, %v1447_v17  ;;  %v687_v60 = vmax.f32 %v586_v16, 0.0 }
  0xe8   :  { %v754_v37 = vmin.f32 %v706_v52, 6.0  ;;  %v701_v14 = vmax.f32 %v628_v50, 0.0  ;;  %v750_v38 = vmin.f32 %v702_v6, 6.0  ;;  %v738_v3 = vmin.f32 %v690_v35, 6.0 }
  0xe9   :  { %v742_v9 = vmin.f32 %v694_v58, 6.0  ;;  %v580_v31 = vadd.f32 %v1386_v8, %v1453_v33  ;;  %v737_v48 = vmin.f32 %v689_v36, 6.0  ;;  %v698_v0 = vmax.f32 %v619_v45, 0.0  ;;  %v1546_v36 = vld [vmem:[#allocation8_spill] sm:$0xff]  ;;  %v1548_v45 = vld [vmem:[#allocation2_spill] sm:$0xff] }
  0xea   :  { %833 = vmatpush.msrb.mxu3 %v754_v37  ;;  %v748_v58 = vmin.f32 %v700_v41, 6.0  ;;  %v577_v26 = vadd.f32 %v1378_v61, %v1449_v15  ;;  %v686_v57 = vmax.f32 %v583_v30, 0.0  ;;  %v736_v23 = vmin.f32 %v688_v5, 6.0  ;;  %v1547_v41 = vld [vmem:[#allocation10_spill] sm:$0xff]  ;;  %v1550_v30 = vld [vmem:[#allocation9_spill] sm:$0xff] }
  0xeb   :  { %806 = vmatpush.msrb.mxu2 %v742_v9  ;;  %v685_v37 = vmax.f32 %v580_v31, 0.0  ;;  %v574_v49 = vadd.f32 %v1368_v53, %v1461_v39  ;;  %v735_v8 = vmin.f32 %v687_v60, 6.0  ;;  %v746_v33 = vmin.f32 %v698_v0, 6.0  ;;  %v1551_v0 = vld [vmem:[#allocation6_spill] sm:$0xff] }
  0xec   :  { %834 = vmatpush.msrb.mxu3 %v753_v54  ;;  %v561_v52 = vpop.f32.mrf.mxu0  ;;  %v684_v9 = vmax.f32 %v577_v26, 0.0  ;;  %v734_v50 = vmin.f32 %v686_v57, 6.0  ;;  %v559_v1 = vadd.f32 %v1457_v47, %v1410_v32  ;;  %v763_v47 = vld [vmem:[%s1535_s3 + $0x8] sm:$0xff]  ;;  %v553_v32 = vadd.f32 %v1445_v7, %v1431_v55 }
  0xed   :  { %807 = vmatpush.msrb.mxu2 %v741_v10  ;;  %v285_v44 = vpop.permute.xlu1 %284  ;;  %v200_v17 = vpop.permute.xlu0 %199  ;;  %v683_v61 = vmax.f32 %v574_v49, 0.0  ;;  %v733_v54 = vmin.f32 %v685_v37, 6.0  ;;  %v562_v28 = vadd.f32 %v561_v52, %v1400_v24  ;;  %v556_v24 = vadd.f32 %v1451_v25, %v1420_v40  ;;  %v1554_v37 = vld [vmem:[#allocation3_spill] sm:$0xff] }
  0xee   :  { %835 = vmatpush.msrb.mxu3 %v752_v12  ;;  %v622_v51 = vadd.f32 %v1404_v29, %v285_v44  ;;  %v749_v29 = vmin.f32 %v701_v14, 6.0  ;;  %v571_v13 = vadd.f32 %v1360_v46, %v200_v17  ;;  %v732_v39 = vmin.f32 %v684_v9, 6.0 }
  0xef   :  { %808 = vmatpush.msrb.mxu2 %v740_v19  ;;  %v731_v12 = vmin.f32 %v683_v61, 6.0  ;;  %v679_v52 = vmax.f32 %v562_v28, 0.0  ;;  %v678_v62 = vmax.f32 %v559_v1, 0.0  ;;  %v550_v44 = vadd.f32 %v1443_v2, %v1372_v56  ;;  %v767_v19 = vld [vmem:[%s1535_s3 + $0x28] sm:$0x1] }
  0xf0   :  { %836 = vmatpush.msrb.mxu3 %v751_v42  ;;  %v699_v4 = vmax.f32 %v622_v51, 0.0  ;;  %v682_v10 = vmax.f32 %v571_v13, 0.0  ;;  %v677_v40 = vmax.f32 %v556_v24, 0.0  ;;  %v547_v14 = vadd.f32 %v1435_v18, %v1322_v27  ;;  %v766_v56 = vld [vmem:[%s1535_s3 + $0x20] sm:$0x1] }
  0xf1   :  { %809 = vmatpush.msrb.mxu2 %v739_v34  ;;  %v727_v25 = vmin.f32 %v679_v52, 6.0  ;;  %v676_v51 = vmax.f32 %v553_v32, 0.0  ;;  %v726_v55 = vmin.f32 %v678_v62, 6.0  ;;  %v675_v7 = vmax.f32 %v550_v44, 0.0  ;;  %v762_v13 = vld [vmem:[%s1535_s3] sm:$0xff] }
  0xf2   :  { %837 = vmatpush.msrb.mxu3 %v750_v38  ;;  %v747_v43 = vmin.f32 %v699_v4, 6.0  ;;  %v730_v35 = vmin.f32 %v682_v10, 6.0  ;;  %v725_v42 = vmin.f32 %v677_v40, 6.0  ;;  %v674_v2 = vmax.f32 %v547_v14, 0.0  ;;  %v1549_v38 = vld [vmem:[#allocation7_spill] sm:$0xff] }
  0xf3   :  { %810 = vmatpush.msrb.mxu2 %v738_v3  ;;  %v724_v16 = vmin.f32 %v676_v51, 6.0  ;;  %v538_v34 = vadd.f32 %v1546_v36, %v1303_v21  ;;  %v673_v27 = vmax.f32 %v1547_v41, 0.0  ;;  %v723_v18 = vmin.f32 %v675_v7, 6.0 }
  0xf4   :  { %838 = vmatpush.msrb.mxu3 %v749_v29  ;;  %v564_v20 = vpop.f32.mrf.mxu0  ;;  %v535_v5 = vadd.f32 %v1549_v38, %v1548_v45  ;;  %v672_v3 = vmax.f32 %v1550_v30, 0.0  ;;  %v722_v4 = vmin.f32 %v674_v2, 6.0  ;;  %v666_v49 = vmax.f32 %v1554_v37, 0.0 }
  0xf5   :  { %811 = vmatpush.msrb.mxu2 %v737_v48  ;;  %v565_v15 = vadd.f32 %v564_v20, %v1392_v11  ;;  %v764_v11 = vld [vmem:[%s1535_s3 + $0x10] sm:$0xff]  ;;  %v671_v29 = vmax.f32 %v538_v34, 0.0  ;;  %v721_v60 = vmin.f32 %v673_v27, 6.0  ;;  %v669_v20 = vmax.f32 %v1551_v0, 0.0 }
  0xf6   :  { %839 = vmatpush.msrb.mxu3 %v748_v58  ;;  %v670_v31 = vmax.f32 %v535_v5, 0.0  ;;  %v720_v48 = vmin.f32 %v672_v3, 6.0  ;;  %v1552_v58 = vld [vmem:[#allocation5_spill] sm:$0xff]  ;;  %v714_v9 = vmin.f32 %v666_v49, 6.0 }
  0xf7   :  { %812 = vmatpush.msrb.mxu2 %v736_v23  ;;  %v680_v46 = vmax.f32 %v565_v15, 0.0  ;;  %v719_v21 = vmin.f32 %v671_v29, 6.0  ;;  %v668_v26 = vmax.f32 %v1552_v58, 0.0  ;;  %v1553_v23 = vld [vmem:[#allocation4_spill] sm:$0xff]  ;;  %v773_v15 = vpop.permute.xlu0 %772 }
  0xf8   :  { %840 = vmatpush.msrb.mxu3 %v747_v43  ;;  %v718_v57 = vmin.f32 %v670_v31, 6.0  ;;  %v667_v17 = vmax.f32 %v1553_v23, 0.0  ;;  %v717_v43 = vmin.f32 %v669_v20, 6.0 }
  0xf9   :  { %813 = vmatpush.msrb.mxu2 %v735_v8  ;;  %v728_v22 = vmin.f32 %v680_v46, 6.0  ;;  %v716_v8 = vmin.f32 %v668_v26, 6.0 }
  0xfa   :  { %841 = vmatpush.msrb.mxu3 %v746_v33  ;;  %v715_v33 = vmin.f32 %v667_v17, 6.0 }
  0xfb   :  { %814 = vmatpush.msrb.mxu2 %v734_v50  ;;  %842 = vmatmul.f32.vlgmr.msrb.gmra.mxu3 %v764_v11  ;;  %v765_v50 = vld [vmem:[%s1535_s3 + $0x18] sm:$0x1] }
  0xfc   :  { %v567_v59 = vpop.f32.mrf.mxu0 }
  0xfd   :  { %v568_v53 = vadd.f32 %v567_v59, %v1382_v63  ;;  %815 = vmatpush.msrb.mxu2 %v733_v54 }
  0xff   :  { %v681_v6 = vmax.f32 %v568_v53, 0.0  ;;  %816 = vmatpush.msrb.mxu2 %v732_v39  ;;  %v778_v39 = vpop.permute.xlu1 %777 }
 0x101   :  { %817 = vmatpush.msrb.mxu2 %v731_v12  ;;  %v729_v63 = vmin.f32 %v681_v6, 6.0 }
 0x103   :  { %780 = vmatpush.msrb.mxu1 %v729_v63  ;;  %818 = vmatpush.msrb.mxu2 %v730_v35 }
 0x104   :  { %819 = vmatmul.f32.vlgmr.msrb.gmra.mxu2 %v763_v47  ;;  %845 = vmatmul.f32.gmra.mxu3 %v767_v19 }
 0x105   :  { %781 = vmatpush.msrb.mxu1 %v728_v22 }
 0x107   :  { %782 = vmatpush.msrb.mxu1 %v727_v25  ;;  %v849_v25 = vlaneseq }
 0x109   :  { %783 = vmatpush.msrb.mxu1 %v726_v55  ;;  %v850_v7 = vshrl.u32 %v849_v25, 7 }
 0x10b   :  { %784 = vmatpush.msrb.mxu1 %v725_v42  ;;  %vm896_vm4 = vcmp.lt.s32.totalorder %v850_v7, 4 }
 0x10c   :  { %822 = vmatmul.f32.gmra.mxu2 %v766_v56 }
 0x10d   :  { %785 = vmatpush.msrb.mxu1 %v724_v16 }
 0x10f   :  { %786 = vmatpush.msrb.mxu1 %v723_v18 }
 0x111   :  { %787 = vmatpush.msrb.mxu1 %v722_v4 }
 0x113   :  { %788 = vmatpush.msrb.mxu1 %v721_v60 }
 0x115   :  { %789 = vmatpush.msrb.mxu1 %v720_v48 }
 0x117   :  { %790 = vmatpush.msrb.mxu1 %v719_v21 }
 0x119   :  { %791 = vmatpush.msrb.mxu1 %v718_v57 }
 0x11b   :  { %792 = vmatpush.msrb.mxu1 %v717_v43 }
 0x11d   :  { %793 = vmatpush.msrb.mxu1 %v716_v8 }
 0x11f   :  { %794 = vmatpush.msrb.mxu1 %v715_v33 }
 0x121   :  { %795 = vmatpush.msrb.mxu1 %v714_v9 }
 0x122   :  { %796 = vmatmul.f32.vlgmr.msrb.gmra.mxu1 %v762_v13 }
 0x12a   :  { %799 = vmatmul.f32.gmra.mxu1 %v765_v50 }
 0x17e   :  { %v843_v59 = vpop.f32.mrf.mxu3 }
 0x187   :  { %v820_v61 = vpop.f32.mrf.mxu2  ;;  %v846_v24 = vpop.f32.mrf.mxu3 }
 0x18f   :  { %v823_v6 = vpop.f32.mrf.mxu2 }
 0x19f   :  { %v797_v54 = vpop.f32.mrf.mxu1 }
 0x1a0   :  { %v798_v28 = vadd.f32 %v797_v54, %v773_v15 }
 0x1a2   :  { %v821_v10 = vadd.f32 %v820_v61, %v798_v28 }
 0x1a4   :  { %v844_v53 = vadd.f32 %v843_v59, %v821_v10 }
 0x1a6   :  { %v858_v1 = vsub.f32 0.0, %v844_v53  ;;  %v856_v55 = vmax.f32 %v844_v53, 0.0 }
 0x1a7   :  { %v800_v46 = vpop.f32.mrf.mxu1 }
 0x1a8   :  { %v864_v12 = vand.u32 2147483647, %v858_v1  ;;  %v801_v11 = vadd.f32 %v800_v46, %v778_v39  ;;  %vm860_vm3 = vcmp.ne.f32.partialorder %v858_v1, %v858_v1 }
 0x1aa   :  { %v866_v52 = vsub.f32 0.0, %v864_v12  ;;  %v824_v63 = vadd.f32 %v823_v6, %v801_v11 }
 0x1ac   :  { %v868_v35 = vmul.f32 1.442695, %v866_v52  ;;  %v847_v47 = vadd.f32 %v846_v24, %v824_v63 }
 0x1ae   :  { %968 = vpow2.f32 %v868_v35  ;;  %907 = vst.msk [vmem:[%s1536_s5 + $0x8] sm:$0x1] %vm906_vm1, %v847_v47 }
 0x1b4   :  { %v969_v32 = vpop.eup %968 }
 0x1b5   :  { %v872_v62 = vadd.f32 1.0, %v969_v32  ;;  %v875_v22 = vmul.f32 -0.5, %v969_v32  ;;  %v878_v40 = vand.u32 2147483647, %v969_v32 }
 0x1b7   :  { %970 = vlog2.f32 %v872_v62  ;;  %v876_v44 = vadd.f32 1.0, %v875_v22  ;;  %vm879_vm2 = vcmp.lt.f32.partialorder %v878_v40, 0.0004427343 }
 0x1b8   :  { %972 = vtanh.f32 %v844_v53 }
 0x1b9   :  { %v877_v51 = vmul.f32 %v969_v32, %v876_v44 }
 0x1bd   :  { %v971_v19 = vpop.eup %970 }
 0x1be   :  { %v874_v14 = vmul.f32 0.6931472, %v971_v19  ;;  %v973_v56 = vpop.eup %972 }
 0x1bf   :  { %v854_v36 = vmul.f32 180.0, %v973_v56 }
 0x1c0   :  { %v880_v42 = vsel %vm879_vm2, %v877_v51, %v874_v14 }
 0x1c1   :  { %v890_v2 = vadd.f32 %v880_v42, %v856_v55 }
 0x1c3   :  { %v892_v16 = vsel %vm860_vm3, %v844_v53, %v890_v2 }
 0x1c4   :  { %v894_v34 = vadd.f32 0.001, %v892_v16 }
 0x1c6   :  { %v902_v41 = vsel %vm896_vm4, %v854_v36, %v894_v34 }
 0x1c7   :  { %905 = vst.msk [vmem:[%s1536_s5] sm:$0xff] %vm904_vm5, %v902_v41 }

</bundles_post_ra>
